<compile_context>
chip_gen: v6e
topology: v6e:2x2x1
jax: 0.10.0
libtpu: 0.0.40
codegen_flags: <defaults>
</compile_context>

<pallas_src>
import jax
import jax.numpy as jnp
from jax.experimental import pallas as pl
from jax.experimental.pallas import tpu as pltpu


def _round_up(n, m):
    return ((n + m - 1) // m) * m


def _layout(n_input, n_features, n_output):
    """Static, 8/128-aligned layout of the packed parameter buffers."""
    Kp = _round_up(n_input, 8)        # padded concat(state, action) features
    Hp = _round_up(n_features, 128)   # padded hidden width
    Np = _round_up(n_output, 8)       # padded output rows (layer-3 lhs)
    off_w2t = 0                       # (Hp, Hp)  W2^T
    off_w3t = off_w2t + Hp            # (Np, Hp)  W3^T (zero-padded rows)
    off_b1 = off_w3t + Np             # (Hp, 1)   b1 as a column (lane 0)
    off_b2 = off_b1 + Hp              # (Hp, 1)   b2 as a column (lane 0)
    off_b3 = off_b2 + Hp              # (Np, 1)   b3 as a column (lane 0)
    R = off_b3 + Np
    return dict(Kp=Kp, Hp=Hp, Np=Np, R=R, off_w2t=off_w2t, off_w3t=off_w3t,
                off_b1=off_b1, off_b2=off_b2, off_b3=off_b3)


def pack_critic_params(params, n_state, n_action):
    """One-time packing of (in,out)-layout params into padded, transposed
    f32 buffers: (w1t, slab).  Hoisted out of the per-call path."""
    w1, b1, w2, b2, w3, b3 = params
    n_input, H = w1.shape
    n_output = w3.shape[1]
    assert n_input == n_state + n_action
    L = _layout(n_input, H, n_output)
    Kp, Hp, Np, R = L["Kp"], L["Hp"], L["Np"], L["R"]

    w1t = jnp.zeros((Hp, Kp), jnp.float32)
    w1t = w1t.at[:H, :n_input].set(w1.astype(jnp.float32).T)

    slab = jnp.zeros((R, Hp), jnp.float32)
    slab = slab.at[L["off_w2t"]:L["off_w2t"] + H, :H].set(
        w2.astype(jnp.float32).T)
    slab = slab.at[L["off_w3t"]:L["off_w3t"] + n_output, :H].set(
        w3.astype(jnp.float32).T)
    slab = slab.at[L["off_b1"]:L["off_b1"] + H, 0].set(b1.astype(jnp.float32))
    slab = slab.at[L["off_b2"]:L["off_b2"] + H, 0].set(b2.astype(jnp.float32))
    slab = slab.at[L["off_b3"]:L["off_b3"] + n_output, 0].set(
        b3.astype(jnp.float32))
    return w1t, slab


def make_critic_forward(n_state, n_action, n_features, n_output,
                        batch_tile=1024):
    """Build a jitted forward(state, action, packed_params) -> q."""
    n_input = n_state + n_action
    L = _layout(n_input, n_features, n_output)
    Kp, Hp, Np, R = L["Kp"], L["Hp"], L["Np"], L["R"]
    o_w2t, o_w3t = L["off_w2t"], L["off_w3t"]
    o_b1, o_b2, o_b3 = L["off_b1"], L["off_b2"], L["off_b3"]

    def kernel(xt_ref, w1t_ref, p_ref, o_ref):
        # Layer 1 on the MXU (K = Kp = 8): (Hp, Kp) @ (Kp, TB) -> (Hp, TB).
        h = jnp.dot(w1t_ref[...], xt_ref[...],
                    preferred_element_type=jnp.float32)
        h = jnp.maximum(h + p_ref[o_b1:o_b1 + Hp, 0:1], 0.0)
        # Layer 2: (Hp, Hp) @ (Hp, TB) -> (Hp, TB).
        h = jnp.dot(p_ref[o_w2t:o_w2t + Hp, :], h,
                    preferred_element_type=jnp.float32)
        h = jnp.maximum(h + p_ref[o_b2:o_b2 + Hp, 0:1], 0.0)
        # Layer 3: (Np, Hp) @ (Hp, TB) -> (Np, TB); only n_output rows real.
        q = jnp.dot(p_ref[o_w3t:o_w3t + Np, :], h,
                    preferred_element_type=jnp.float32)
        # Lane-dense, batch-major output row(s): (n_output, TB).
        o_ref[...] = q[:n_output, :] + p_ref[o_b3:o_b3 + n_output, 0:1]

    @jax.jit
    def forward(state, action, packed):
        w1t, slab = packed
        assert state.shape[1] == n_state and action.shape[1] == n_action
        B = state.shape[0]

        # --- static batch tiling (TB is always a multiple of 128) ---
        Bp128 = _round_up(max(B, 1), 128)
        if Bp128 > batch_tile:
            TB = batch_tile
        elif Bp128 >= 256:
            # Keep >= 2 grid steps so both v7x TensorCores get work.
            TB = _round_up(-(-Bp128 // 2), 128)
        else:
            TB = Bp128
        Bp = _round_up(Bp128, TB)

        # Pack [state | action] once, zero-pad to (Kp, Bp), feature-major.
        x = jnp.concatenate(
            (state.astype(jnp.float32), action.astype(jnp.float32)), axis=1)
        xt = jnp.pad(x.T, ((0, Kp - n_input), (0, Bp - B)))

        flops = 2 * Bp * (Kp * Hp + Hp * Hp + Hp * Np)
        bytes_accessed = 4 * (Kp * Bp + n_output * Bp + R * Hp + Hp * Kp)

        qt = pl.pallas_call(
            kernel,
            out_shape=jax.ShapeDtypeStruct((n_output, Bp), jnp.float32),
            grid_spec=pltpu.PrefetchScalarGridSpec(
                num_scalar_prefetch=0,
                grid=(Bp // TB,),
                in_specs=[
                    pl.BlockSpec((Kp, TB), lambda i: (0, i)),
                    # Constant index_maps -> parameters stay VMEM-resident
                    # across grid steps (single DMA each).
                    pl.BlockSpec((Hp, Kp), lambda i: (0, 0)),
                    pl.BlockSpec((R, Hp), lambda i: (0, 0)),
                ],
                out_specs=pl.BlockSpec((n_output, TB), lambda i: (0, i)),
            ),
            compiler_params=pltpu.CompilerParams(
                dimension_semantics=("parallel",),
                vmem_limit_bytes=32 * 1024 * 1024),
            cost_estimate=pl.CostEstimate(
                flops=flops, transcendentals=0,
                bytes_accessed=bytes_accessed),
        )(xt, w1t, slab)

        # (n_output, Bp) -> (B, n_output), then torch.squeeze semantics.
        return jnp.squeeze(qt[:, :B].T)

    return forward


def init_critic_params(key, n_input, n_features, n_output):
    """Xavier-uniform weights (relu gain for h1/h2, linear for h3), PyTorch
    default biases.  Weights returned in (in, out) layout."""
    def xavier(k, fan_in, fan_out, gain):
        bound = gain * jnp.sqrt(6.0 / (fan_in + fan_out))
        return jax.random.uniform(k, (fan_in, fan_out), jnp.float32,
                                  minval=-bound, maxval=bound)

    def bias(k, fan_in, fan_out):
        bound = 1.0 / jnp.sqrt(fan_in)
        return jax.random.uniform(k, (fan_out,), jnp.float32,
                                  minval=-bound, maxval=bound)

    gain_relu = jnp.sqrt(2.0)
    gain_lin = 1.0
    ks = jax.random.split(key, 6)
    w1 = xavier(ks[0], n_input, n_features, gain_relu)
    b1 = bias(ks[1], n_input, n_features)
    w2 = xavier(ks[2], n_features, n_features, gain_relu)
    b2 = bias(ks[3], n_features, n_features)
    w3 = xavier(ks[4], n_features, n_output, gain_lin)
    b3 = bias(ks[5], n_features, n_output)
    return (w1, b1, w2, b2, w3, b3)


def _reference_forward(state, action, params):
    """Pure-JAX reference for correctness checking."""
    w1, b1, w2, b2, w3, b3 = params
    x = jnp.concatenate(
        (state.astype(jnp.float32), action.astype(jnp.float32)), axis=1)
    h1 = jnp.maximum(x @ w1 + b1, 0.0)
    h2 = jnp.maximum(h1 @ w2 + b2, 0.0)
    return jnp.squeeze(h2 @ w3 + b3)


if __name__ == "__main__":
    # Cartpole-SAC-like sizes: state dim 4, action dim 1, n_features 32, Q out 1.
    B, N_STATE, N_ACTION, N_FEATURES, N_OUTPUT = 2, 4, 1, 32, 1
    N_INPUT = N_STATE + N_ACTION

    key = jax.random.PRNGKey(0)
    k_state, k_action, k_params, k_big = jax.random.split(key, 4)

    state = jax.random.normal(k_state, (B, N_STATE), dtype=jnp.float32)
    action = jax.random.normal(k_action, (B, N_ACTION), dtype=jnp.float32)
    params = init_critic_params(k_params, N_INPUT, N_FEATURES, N_OUTPUT)

    # One-time parameter packing (hoisted out of the per-call path).
    packed = jax.block_until_ready(
        pack_critic_params(params, N_STATE, N_ACTION))
    critic_forward = make_critic_forward(N_STATE, N_ACTION, N_FEATURES,
                                         N_OUTPUT)

    # Small (100 Hz control-path) batch.
    q = jax.block_until_ready(critic_forward(state, action, packed))
    q_ref = _reference_forward(state, action, params)
    assert q.shape == (B,), q.shape
    assert jnp.allclose(q, q_ref, atol=1e-5, rtol=1e-5), (q, q_ref)

    # Larger replay-style batch: exercises a multi-step "parallel" grid
    # (2 tiles of 256) and padded batch columns.
    B2 = 300
    kb1, kb2 = jax.random.split(k_big)
    state2 = jax.random.normal(kb1, (B2, N_STATE), dtype=jnp.float32)
    action2 = jax.random.normal(kb2, (B2, N_ACTION), dtype=jnp.float32)
    q2 = jax.block_until_ready(critic_forward(state2, action2, packed))
    q2_ref = _reference_forward(state2, action2, params)
    assert q2.shape == (B2,), q2.shape
    assert jnp.allclose(q2, q2_ref, atol=1e-4, rtol=1e-4), \
        float(jnp.max(jnp.abs(q2 - q2_ref)))

    print("KERNEL_OK")
</pallas_src>

<mosaic_0001>
module attributes {stable_mosaic.version = 11 : i64} {
  func.func @kernel(%arg0: i32, %arg1: memref<8x128xf32, #tpu.memory_space<vmem>>, %arg2: memref<128x8xf32, #tpu.memory_space<vmem>>, %arg3: memref<400x128xf32, #tpu.memory_space<vmem>>, %arg4: memref<1x128xf32, #tpu.memory_space<vmem>>) attributes {dimension_semantics = [#tpu.dimension_semantics<parallel>], iteration_bounds = array<i64: 1>, scalar_prefetch = 0 : i64, scratch_operands = 0 : i64, tpu.core_type = #tpu.core_type<tc>, window_params = [{transform_indices = @transform_0, window_bounds = array<i64: 8, 128>}, {pipeline_mode = #tpu.pipeline_mode<synchronous>, transform_indices = @transform_1, window_bounds = array<i64: 128, 8>}, {pipeline_mode = #tpu.pipeline_mode<synchronous>, transform_indices = @transform_2, window_bounds = array<i64: 400, 128>}, {transform_indices = @transform_3, window_bounds = array<i64: 1, 128>}]} {
    %c0 = arith.constant 0 : index
    %c0_0 = arith.constant 0 : index
    %0 = vector.load %arg2[%c0, %c0_0] : memref<128x8xf32, #tpu.memory_space<vmem>>, vector<128x8xf32>
    %c0_1 = arith.constant 0 : index
    %c0_2 = arith.constant 0 : index
    %1 = vector.load %arg1[%c0_1, %c0_2] : memref<8x128xf32, #tpu.memory_space<vmem>>, vector<8x128xf32>
    %cst = arith.constant dense<0.000000e+00> : vector<128x128xf32>
    %2 = tpu.matmul %0, %1, %cst {dimension_numbers = #tpu.dot_dimension_numbers<[1], [0], [0], [1], [0, 0, 1, 1], [], []>} : vector<128x8xf32>, vector<8x128xf32>, vector<128x128xf32> -> vector<128x128xf32>
    %c136 = arith.constant 136 : index
    %c0_3 = arith.constant 0 : index
    %3 = vector.load %arg3[%c136, %c0_3] : memref<400x128xf32, #tpu.memory_space<vmem>>, vector<128x1xf32>
    %4 = vector.broadcast %3 : vector<128x1xf32> to vector<128x128xf32>
    %5 = arith.addf %2, %4 : vector<128x128xf32>
    %cst_4 = arith.constant 0.000000e+00 : f32
    %6 = vector.broadcast %cst_4 : f32 to vector<128x128xf32>
    %7 = arith.maximumf %5, %6 : vector<128x128xf32>
    %c0_5 = arith.constant 0 : index
    %c0_6 = arith.constant 0 : index
    %8 = vector.load %arg3[%c0_5, %c0_6] : memref<400x128xf32, #tpu.memory_space<vmem>>, vector<128x128xf32>
    %cst_7 = arith.constant dense<0.000000e+00> : vector<128x128xf32>
    %9 = tpu.matmul %8, %7, %cst_7 {dimension_numbers = #tpu.dot_dimension_numbers<[1], [0], [0], [1], [0, 0, 1, 1], [], []>} : vector<128x128xf32>, vector<128x128xf32>, vector<128x128xf32> -> vector<128x128xf32>
    %c264 = arith.constant 264 : index
    %c0_8 = arith.constant 0 : index
    %10 = vector.load %arg3[%c264, %c0_8] : memref<400x128xf32, #tpu.memory_space<vmem>>, vector<128x1xf32>
    %11 = vector.broadcast %10 : vector<128x1xf32> to vector<128x128xf32>
    %12 = arith.addf %9, %11 : vector<128x128xf32>
    %cst_9 = arith.constant 0.000000e+00 : f32
    %13 = vector.broadcast %cst_9 : f32 to vector<128x128xf32>
    %14 = arith.maximumf %12, %13 : vector<128x128xf32>
    %c128 = arith.constant 128 : index
    %c0_10 = arith.constant 0 : index
    %15 = vector.load %arg3[%c128, %c0_10] : memref<400x128xf32, #tpu.memory_space<vmem>>, vector<8x128xf32>
    %cst_11 = arith.constant dense<0.000000e+00> : vector<8x128xf32>
    %16 = tpu.matmul %15, %14, %cst_11 {dimension_numbers = #tpu.dot_dimension_numbers<[1], [0], [0], [1], [0, 0, 1, 1], [], []>} : vector<8x128xf32>, vector<128x128xf32>, vector<8x128xf32> -> vector<8x128xf32>
    %17 = vector.extract_strided_slice %16 {offsets = [0, 0], sizes = [1, 128], strides = [1, 1]} : vector<8x128xf32> to vector<1x128xf32>
    %c392 = arith.constant 392 : index
    %c0_12 = arith.constant 0 : index
    %18 = vector.load %arg3[%c392, %c0_12] : memref<400x128xf32, #tpu.memory_space<vmem>>, vector<1x1xf32>
    %19 = vector.broadcast %18 : vector<1x1xf32> to vector<1x128xf32>
    %20 = arith.addf %17, %19 : vector<1x128xf32>
    %c0_13 = arith.constant 0 : index
    %c0_14 = arith.constant 0 : index
    %21 = vector.load %arg4[%c0_13, %c0_14] : memref<1x128xf32, #tpu.memory_space<vmem>>, vector<1x128xf32>
    tpu.vector_store %arg4[%c0_13, %c0_14], %20 {strides = array<i32>} : memref<1x128xf32, #tpu.memory_space<vmem>>, vector<1x128xf32>,
    return
  }
  func.func @transform_0(%arg0: i32) -> (i32, i32) {
    %c0_i32 = arith.constant 0 : i32
    %c0_i32_0 = arith.constant 0 : i32
    return %c0_i32, %arg0 : i32, i32
  }
  func.func @transform_1(%arg0: i32) -> (i32, i32) {
    %c0_i32 = arith.constant 0 : i32
    %c0_i32_0 = arith.constant 0 : i32
    %c0_i32_1 = arith.constant 0 : i32
    return %c0_i32, %c0_i32_0 : i32, i32
  }
  func.func @transform_2(%arg0: i32) -> (i32, i32) {
    %c0_i32 = arith.constant 0 : i32
    %c0_i32_0 = arith.constant 0 : i32
    %c0_i32_1 = arith.constant 0 : i32
    return %c0_i32, %c0_i32_0 : i32, i32
  }
  func.func @transform_3(%arg0: i32) -> (i32, i32) {
    %c0_i32 = arith.constant 0 : i32
    %c0_i32_0 = arith.constant 0 : i32
    return %c0_i32, %arg0 : i32, i32
  }
}

</mosaic_0001>

<bundles_post_ra>
// kernel: forward.1
= control target key start
LH: loop header
LB: loop body
LE: loop exit
PB: predicated region body
PF: predicated region fallthrough
CT: control target
= control target key end

     0   :  { %8 = vsyncpa [#allocation3], 0  ;;  %s937_s12 = smov [#allocation2]   ;;  %s1077_s0 = inlined_call_operand.vmem [shape: f32[8,128], index: 0, kind: input, shape index: {}]   ;;  %s1078_s1 = inlined_call_operand.vmem [shape: f32[128,8], index: 1, kind: input, shape index: {}]   ;;  %s1079_s2 = inlined_call_operand.hbm [shape: f32[400,128], index: 2, kind: input, shape index: {}]   ;;  %s1080_s3 = inlined_call_operand.vmem [shape: f32[1,128], index: 3, kind: output, shape index: {}]  }
   0x1   :  { %s18_s13 = sshll.u32 %s937_s12, 4  ;;  %s19_s13 = int_to_ptr.vmem [resolvable:$true] %s18_s13 }
   0x2   :  { %s923_s14 = scalar_lea.vmem %s19_s13, 6400  ;;  %p928_p1 = scmp.lt.s32.totalorder %s19_s13, %s19_s13 }
   0x3   :  { %p924_p0 = scmp.ne.s32.totalorder %s19_s13, %s923_s14  ;;  %p929_p2 = scmp.lt.s32.totalorder %s923_s14, %s923_s14 }
   0x5   :  { %p930_p3 = por %p929_p2, %p928_p1 }
   0x7   :  { %p931_p4 = pnand %p930_p3, %p924_p0 }
   0x9   :  { %934 = shalt.err (!%p931_p4)
}
   0xa   :  { %s938_s15 = smov 128   ;;  %s939_s16 = smov 8  }
   0xb   :  { %24 = dma.hbm_to_vmem [thread:$0]  %s1079_s2, 6400, %s19_s13, [#allocation3], %s938_s15, %s938_s15, %s939_s16  }
   0xc   :  { %935 = dma.done.wait [#allocation3], 6400  }
   0xd   :  { %936 = vsyncadd [#allocation3], 4294960896  ;;  %v940_v0 = vmov 0   ;;  %vm141_vm0 = vcmask 64512   ;;  %v44_v1 = vld [vmem:[%s1077_s0] sm:$0xff]  ;;  %v29_v3 = vld [vmem:[%s1078_s1 + $0x8] sm:$0xff] }
   0xe   :  { %913 = vset.pattern.permute.xlu0 %v940_v0  ;;  %914 = vset.pattern.permute.xlu1 %v940_v0  ;;  %v28_v2 = vld [vmem:[%s1078_s1] sm:$0xff]  ;;  %v30_v4 = vld [vmem:[%s1078_s1 + $0x10] sm:$0xff]  ;;  %v31_v5 = vld [vmem:[%s1078_s1 + $0x18] sm:$0xff]  ;;  %vm942_vm1 = vmmov 0  }
   0xf   :  { %790 = vmatprep.subr.mxu0 %v44_v1  ;;  %792 = vmatprep.mubr.msk.f32.mxu0 %vm141_vm0, %v28_v2  ;;  %v32_v6 = vld [vmem:[%s1078_s1 + $0x20] sm:$0xff]  ;;  %v58_v8 = vld [vmem:[#allocation2 + $0xf0] sm:$0xff]  ;;  %v59_v9 = vld [vmem:[#allocation2 + $0xf8] sm:$0xff] }
  0x10   :  { %791 = vmatpush3.msra.mxu0 %v44_v1  ;;  %v60_v7 = vld [vmem:[#allocation2 + $0x100] sm:$0xff]  ;;  %128 = vperm.xlu1 %914, %v58_v8   ;;  %v33_v10 = vld [vmem:[%s1078_s1 + $0x28] sm:$0xff]  ;;  %v34_v12 = vld [vmem:[%s1078_s1 + $0x30] sm:$0xff] }
  0x11   :  { %793 = vmatmul.mubr.msk.f32.vlgmr.msra.gmra.mxu0 %vm141_vm0, %v29_v3  ;;  %138 = vperm.xlu0 %913, %v60_v7   ;;  %v57_v11 = vld [vmem:[#allocation2 + $0xe8] sm:$0xff]  ;;  %v56_v13 = vld [vmem:[#allocation2 + $0xe0] sm:$0xff]  ;;  %v35_v14 = vld [vmem:[%s1078_s1 + $0x38] sm:$0xff] }
  0x12   :  { %795 = vmatprep.mubr.msk.f32.mxu0 %vm141_vm0, %v30_v4  ;;  %v55_v15 = vld [vmem:[#allocation2 + $0xd8] sm:$0xff]  ;;  %v36_v16 = vld [vmem:[%s1078_s1 + $0x40] sm:$0xff]  ;;  %v54_v17 = vld [vmem:[#allocation2 + $0xd0] sm:$0xff] }
  0x13   :  { %v37_v18 = vld [vmem:[%s1078_s1 + $0x48] sm:$0xff]  ;;  %v38_v20 = vld [vmem:[%s1078_s1 + $0x50] sm:$0xff]  ;;  %v52_v21 = vld [vmem:[#allocation2 + $0xc0] sm:$0xff] }
  0x14   :  { %123 = vperm.xlu1 %914, %v57_v11   ;;  %v53_v19 = vld [vmem:[#allocation2 + $0xc8] sm:$0xff]  ;;  %v39_v22 = vld [vmem:[%s1078_s1 + $0x58] sm:$0xff]  ;;  %v40_v24 = vld [vmem:[%s1078_s1 + $0x60] sm:$0xff] }
  0x15   :  { %796 = vmatmul.mubr.msk.f32.gmra.mxu0 %vm141_vm0, %v31_v5  ;;  %133 = vperm.xlu0 %913, %v59_v9   ;;  %v51_v23 = vld [vmem:[#allocation2 + $0xb8] sm:$0xff]  ;;  %v50_v25 = vld [vmem:[#allocation2 + $0xb0] sm:$0xff]  ;;  %v41_v26 = vld [vmem:[%s1078_s1 + $0x68] sm:$0xff] }
  0x16   :  { %798 = vmatprep.mubr.msk.f32.mxu0 %vm141_vm0, %v32_v6  ;;  %v49_v27 = vld [vmem:[#allocation2 + $0xa8] sm:$0xff]  ;;  %v42_v28 = vld [vmem:[%s1078_s1 + $0x70] sm:$0xff]  ;;  %v48_v29 = vld [vmem:[#allocation2 + $0xa0] sm:$0xff] }
  0x17   :  { %v43_v30 = vld [vmem:[%s1078_s1 + $0x78] sm:$0xff]  ;;  %v46_v32 = vld [vmem:[#allocation2 + $0x90] sm:$0xff]  ;;  %v45_v33 = vld [vmem:[#allocation2 + $0x88] sm:$0xff] }
  0x18   :  { %113 = vperm.xlu1 %914, %v55_v15   ;;  %v47_v31 = vld [vmem:[#allocation2 + $0x98] sm:$0xff]  ;;  %v382_v34 = vld [vmem:[#allocation2 + $0x180] sm:$0xff]  ;;  %v380_v36 = vld [vmem:[#allocation2 + $0x170] sm:$0xff] }
  0x19   :  { %799 = vmatmul.mubr.msk.f32.gmra.mxu0 %vm141_vm0, %v33_v10  ;;  %118 = vperm.xlu0 %913, %v56_v13   ;;  %v381_v35 = vld [vmem:[#allocation2 + $0x178] sm:$0xff]  ;;  %v379_v37 = vld [vmem:[#allocation2 + $0x168] sm:$0xff]  ;;  %v378_v38 = vld [vmem:[#allocation2 + $0x160] sm:$0xff] }
  0x1a   :  { %801 = vmatprep.mubr.msk.f32.mxu0 %vm141_vm0, %v34_v12  ;;  %v377_v39 = vld [vmem:[#allocation2 + $0x158] sm:$0xff]  ;;  %v376_v40 = vld [vmem:[#allocation2 + $0x150] sm:$0xff]  ;;  %v375_v41 = vld [vmem:[#allocation2 + $0x148] sm:$0xff] }
  0x1b   :  { %v374_v42 = vld [vmem:[#allocation2 + $0x140] sm:$0xff]  ;;  %v373_v43 = vld [vmem:[#allocation2 + $0x138] sm:$0xff]  ;;  %v372_v44 = vld [vmem:[#allocation2 + $0x130] sm:$0xff] }
  0x1c   :  { %103 = vperm.xlu1 %914, %v53_v19   ;;  %v371_v45 = vld [vmem:[#allocation2 + $0x128] sm:$0xff]  ;;  %v370_v46 = vld [vmem:[#allocation2 + $0x120] sm:$0xff]  ;;  %v369_v47 = vld [vmem:[#allocation2 + $0x118] sm:$0xff] }
  0x1d   :  { %802 = vmatmul.mubr.msk.f32.gmra.mxu0 %vm141_vm0, %v35_v14  ;;  %108 = vperm.xlu0 %913, %v54_v17   ;;  %v368_v48 = vld [vmem:[#allocation2 + $0x110] sm:$0xff]  ;;  %v367_v49 = vld [vmem:[#allocation2 + $0x108] sm:$0xff]  ;;  %v351_v51 = vld [vmem:[#allocation2] sm:$0xff] }
  0x1e   :  { %804 = vmatprep.mubr.msk.f32.mxu0 %vm141_vm0, %v36_v16  ;;  %v695_v50 = vld [vmem:[#allocation2 + $0x188] sm:$0x1]  ;;  %848 = vmatprep.mubr.f32.mxu1 %v351_v51 }
  0x20   :  { %93 = vperm.xlu1 %914, %v51_v23  }
  0x21   :  { %805 = vmatmul.mubr.msk.f32.gmra.mxu0 %vm141_vm0, %v37_v18  ;;  %98 = vperm.xlu0 %913, %v52_v21  }
  0x22   :  { %807 = vmatprep.mubr.msk.f32.mxu0 %vm141_vm0, %v38_v20 }
  0x24   :  { %83 = vperm.xlu1 %914, %v49_v27  }
  0x25   :  { %808 = vmatmul.mubr.msk.f32.gmra.mxu0 %vm141_vm0, %v39_v22  ;;  %88 = vperm.xlu0 %913, %v50_v25  }
  0x26   :  { %810 = vmatprep.mubr.msk.f32.mxu0 %vm141_vm0, %v40_v24 }
  0x28   :  { %73 = vperm.xlu1 %914, %v47_v31  }
  0x29   :  { %811 = vmatmul.mubr.msk.f32.gmra.mxu0 %vm141_vm0, %v41_v26  ;;  %78 = vperm.xlu0 %913, %v48_v29  }
  0x2a   :  { %813 = vmatprep.mubr.msk.f32.mxu0 %vm141_vm0, %v42_v28 }
  0x2c   :  { %63 = vperm.xlu1 %914, %v45_v33  }
  0x2d   :  { %814 = vmatmul.mubr.msk.f32.gmra.mxu0 %vm141_vm0, %v43_v30  ;;  %68 = vperm.xlu0 %913, %v46_v32  }
  0x30   :  { %455 = vperm.xlu1 %914, %v381_v35  }
  0x31   :  { %460 = vperm.xlu0 %913, %v382_v34  }
  0x34   :  { %445 = vperm.xlu1 %914, %v379_v37  }
  0x35   :  { %450 = vperm.xlu0 %913, %v380_v36  }
  0x38   :  { %435 = vperm.xlu1 %914, %v377_v39  }
  0x39   :  { %440 = vperm.xlu0 %913, %v378_v38  }
  0x3c   :  { %425 = vperm.xlu1 %914, %v375_v41  }
  0x3d   :  { %430 = vperm.xlu0 %913, %v376_v40  }
  0x40   :  { %415 = vperm.xlu1 %914, %v373_v43  }
  0x41   :  { %420 = vperm.xlu0 %913, %v374_v42  }
  0x44   :  { %405 = vperm.xlu1 %914, %v371_v45  }
  0x45   :  { %410 = vperm.xlu0 %913, %v372_v44  }
  0x48   :  { %395 = vperm.xlu1 %914, %v369_v47  }
  0x49   :  { %400 = vperm.xlu0 %913, %v370_v46  }
  0x4c   :  { %385 = vperm.xlu1 %914, %v367_v49  }
  0x4d   :  { %390 = vperm.xlu0 %913, %v368_v48  }
  0x51   :  { %698 = vperm.xlu0 %913, %v695_v50  }
  0x8b   :  { %v129_v60 = vpop.permute.xlu1 %128 }
  0x8c   :  { %v139_v58 = vpop.permute.xlu0 %138 }
  0x8f   :  { %v124_v1 = vpop.permute.xlu1 %123 }
  0x90   :  { %v134_v63 = vpop.permute.xlu0 %133 }
  0x93   :  { %v114_v6 = vpop.permute.xlu1 %113 }
  0x94   :  { %v119_v4 = vpop.permute.xlu0 %118 }
  0x97   :  { %v104_v15 = vpop.permute.xlu1 %103 }
  0x98   :  { %v109_v10 = vpop.permute.xlu0 %108 }
  0x9b   :  { %v94_v23 = vpop.permute.xlu1 %93 }
  0x9c   :  { %v99_v20 = vpop.permute.xlu0 %98 }
  0x9f   :  { %v84_v31 = vpop.permute.xlu1 %83 }
  0xa0   :  { %v89_v28 = vpop.permute.xlu0 %88 }
  0xa3   :  { %v74_v39 = vpop.permute.xlu1 %73 }
  0xa4   :  { %v79_v36 = vpop.permute.xlu0 %78 }
  0xa7   :  { %v64_v47 = vpop.permute.xlu1 %63 }
  0xa8   :  { %v69_v44 = vpop.permute.xlu0 %68 }
  0xd1   :  { %v1033_v52 = vpop.f32.mrf.mxu0 }
  0xd2   :  { %v262_v45 = vadd.f32 %v1033_v52, %v69_v44  ;;  %v354_v52 = vld [vmem:[#allocation2 + $0x18] sm:$0xff] }
  0xd3   :  { %v1035_v53 = vpop.f32.mrf.mxu0 }
  0xd4   :  { %v257_v48 = vadd.f32 %v1035_v53, %v64_v47  ;;  %v336_v50 = vmax.f32 %v262_v45, 0.0  ;;  %v356_v53 = vld [vmem:[#allocation2 + $0x28] sm:$0xff] }
  0xd5   :  { %v1037_v54 = vpop.f32.mrf.mxu0 }
  0xd6   :  { %v272_v40 = vadd.f32 %v1037_v54, %v79_v36  ;;  %v335_v51 = vmax.f32 %v257_v48, 0.0  ;;  %v352_v54 = vld [vmem:[#allocation2 + $0x8] sm:$0xff] }
  0xd7   :  { %v1039_v55 = vpop.f32.mrf.mxu0 }
  0xd8   :  { %v267_v42 = vadd.f32 %v1039_v55, %v74_v39  ;;  %v338_v46 = vmax.f32 %v272_v40, 0.0  ;;  %v353_v55 = vld [vmem:[#allocation2 + $0x10] sm:$0xff] }
  0xd9   :  { %v800_v56 = vpop.f32.mrf.mxu0 }
  0xda   :  { %v282_v34 = vadd.f32 %v800_v56, %v89_v28  ;;  %v337_v49 = vmax.f32 %v267_v42, 0.0  ;;  %v355_v56 = vld [vmem:[#allocation2 + $0x20] sm:$0xff] }
  0xdb   :  { %v276_v57 = vpop.f32.mrf.mxu0 }
  0xdc   :  { %v277_v37 = vadd.f32 %v276_v57, %v84_v31  ;;  %v340_v41 = vmax.f32 %v282_v34, 0.0  ;;  %v357_v57 = vld [vmem:[#allocation2 + $0x30] sm:$0xff] }
  0xdd   :  { %v803_v59 = vpop.f32.mrf.mxu0 }
  0xde   :  { %v292_v29 = vadd.f32 %v803_v59, %v99_v20  ;;  %v339_v43 = vmax.f32 %v277_v37, 0.0  ;;  %v359_v59 = vld [vmem:[#allocation2 + $0x40] sm:$0xff] }
  0xdf   :  { %v286_v61 = vpop.f32.mrf.mxu0 }
  0xe0   :  { %v287_v32 = vadd.f32 %v286_v61, %v94_v23  ;;  %v342_v35 = vmax.f32 %v292_v29, 0.0  ;;  %v361_v61 = vld [vmem:[#allocation2 + $0x50] sm:$0xff] }
  0xe1   :  { %v806_v62 = vpop.f32.mrf.mxu0 }
  0xe2   :  { %v302_v24 = vadd.f32 %v806_v62, %v109_v10  ;;  %v341_v38 = vmax.f32 %v287_v32, 0.0  ;;  %v362_v62 = vld [vmem:[#allocation2 + $0x58] sm:$0xff]  ;;  %v461_v10 = vpop.permute.xlu0 %460 }
  0xe3   :  { %v296_v0 = vpop.f32.mrf.mxu0 }
  0xe4   :  { %v297_v26 = vadd.f32 %v296_v0, %v104_v15  ;;  %v344_v30 = vmax.f32 %v302_v24, 0.0  ;;  %v364_v0 = vld [vmem:[#allocation2 + $0x68] sm:$0xff] }
  0xe5   :  { %v809_v2 = vpop.f32.mrf.mxu0 }
  0xe6   :  { %v312_v18 = vadd.f32 %v809_v2, %v119_v4  ;;  %v343_v33 = vmax.f32 %v297_v26, 0.0  ;;  %v366_v2 = vld [vmem:[#allocation2 + $0x78] sm:$0xff]  ;;  %v451_v15 = vpop.permute.xlu0 %450 }
  0xe7   :  { %v306_v3 = vpop.f32.mrf.mxu0 }
  0xe8   :  { %v307_v21 = vadd.f32 %v306_v3, %v114_v6  ;;  %v346_v25 = vmax.f32 %v312_v18, 0.0  ;;  %v941_v3 = vmov 0.0  }
  0xe9   :  { %v812_v5 = vpop.f32.mrf.mxu0  ;;  %872 = vmatprep.subr.mxu0 %v941_v3  ;;  %904 = vmatprep.mubr.msk.f32.mxu0 %vm942_vm1, %v941_v3 }
  0xea   :  { %v322_v12 = vadd.f32 %v812_v5, %v129_v60  ;;  %v345_v27 = vmax.f32 %v307_v21, 0.0  ;;  %v360_v60 = vld [vmem:[#allocation2 + $0x48] sm:$0xff]  ;;  %v441_v20 = vpop.permute.xlu0 %440 }
  0xeb   :  { %v316_v7 = vpop.f32.mrf.mxu0 }
  0xec   :  { %v317_v16 = vadd.f32 %v316_v7, %v124_v1  ;;  %v348_v19 = vmax.f32 %v322_v12, 0.0  ;;  %v365_v1 = vld [vmem:[#allocation2 + $0x70] sm:$0xff]  ;;  %v456_v12 = vpop.permute.xlu1 %455 }
  0xed   :  { %v815_v8 = vpop.f32.mrf.mxu0 }
  0xee   :  { %v332_v9 = vadd.f32 %v815_v8, %v139_v58  ;;  %v347_v22 = vmax.f32 %v317_v16, 0.0  ;;  %v358_v58 = vld [vmem:[#allocation2 + $0x38] sm:$0xff]  ;;  %v431_v26 = vpop.permute.xlu0 %430 }
  0xef   :  { %v326_v11 = vpop.f32.mrf.mxu0 }
  0xf0   :  { %v350_v13 = vmax.f32 %v332_v9, 0.0  ;;  %v327_v14 = vadd.f32 %v326_v11, %v134_v63  ;;  %v363_v63 = vld [vmem:[#allocation2 + $0x60] sm:$0xff] }
  0xf2   :  { %v349_v17 = vmax.f32 %v327_v14, 0.0  ;;  %816 = vmatprep.subr.mxu1 %v350_v13  ;;  %v421_v36 = vpop.permute.xlu0 %420 }
  0xf3   :  { %817 = vmatpush3.msra.mxu1 %v350_v13 }
  0xf4   :  { %818 = vmatprep.subr.mxu1 %v349_v17 }
  0xf5   :  { %819 = vmatpush3.msra.mxu1 %v349_v17  ;;  %v446_v17 = vpop.permute.xlu1 %445 }
  0xf6   :  { %820 = vmatprep.subr.mxu1 %v348_v19  ;;  %v411_v44 = vpop.permute.xlu0 %410 }
  0xf7   :  { %821 = vmatpush3.msra.mxu1 %v348_v19 }
  0xf8   :  { %822 = vmatprep.subr.mxu1 %v347_v22 }
  0xf9   :  { %823 = vmatpush3.msra.mxu1 %v347_v22  ;;  %v436_v22 = vpop.permute.xlu1 %435 }
  0xfa   :  { %824 = vmatprep.subr.mxu1 %v346_v25 }
  0xfb   :  { %825 = vmatpush3.msra.mxu1 %v346_v25 }
  0xfc   :  { %826 = vmatprep.subr.mxu1 %v345_v27 }
  0xfd   :  { %827 = vmatpush3.msra.mxu1 %v345_v27  ;;  %v426_v31 = vpop.permute.xlu1 %425 }
  0xfe   :  { %828 = vmatprep.subr.mxu1 %v344_v30 }
  0xff   :  { %829 = vmatpush3.msra.mxu1 %v344_v30 }
 0x100   :  { %830 = vmatprep.subr.mxu1 %v343_v33 }
 0x101   :  { %831 = vmatpush3.msra.mxu1 %v343_v33  ;;  %v416_v39 = vpop.permute.xlu1 %415 }
 0x102   :  { %832 = vmatprep.subr.mxu1 %v342_v35 }
 0x103   :  { %833 = vmatpush3.msra.mxu1 %v342_v35 }
 0x104   :  { %834 = vmatprep.subr.mxu1 %v341_v38 }
 0x105   :  { %835 = vmatpush3.msra.mxu1 %v341_v38  ;;  %v406_v47 = vpop.permute.xlu1 %405 }
 0x106   :  { %836 = vmatprep.subr.mxu1 %v340_v41 }
 0x107   :  { %837 = vmatpush3.msra.mxu1 %v340_v41 }
 0x108   :  { %838 = vmatprep.subr.mxu1 %v339_v43 }
 0x109   :  { %839 = vmatpush3.msra.mxu1 %v339_v43 }
 0x10a   :  { %840 = vmatprep.subr.mxu1 %v338_v46 }
 0x10b   :  { %841 = vmatpush3.msra.mxu1 %v338_v46 }
 0x10c   :  { %842 = vmatprep.subr.mxu1 %v337_v49 }
 0x10d   :  { %843 = vmatpush3.msra.mxu1 %v337_v49 }
 0x10e   :  { %844 = vmatprep.subr.mxu1 %v336_v50 }
 0x10f   :  { %845 = vmatpush3.msra.mxu1 %v336_v50 }
 0x110   :  { %846 = vmatprep.subr.mxu1 %v335_v51 }
 0x111   :  { %847 = vmatpush3.msra.mxu1 %v335_v51 }
 0x112   :  { %849 = vmatmul.mubr.f32.vlgmr.msra.gmra.mxu1 %v352_v54  ;;  %v401_v54 = vpop.permute.xlu0 %400 }
 0x113   :  { %851 = vmatprep.mubr.f32.mxu1 %v353_v55 }
 0x116   :  { %852 = vmatmul.mubr.f32.gmra.mxu1 %v354_v52 }
 0x117   :  { %854 = vmatprep.mubr.f32.mxu1 %v355_v56  ;;  %v396_v56 = vpop.permute.xlu1 %395 }
 0x11a   :  { %855 = vmatmul.mubr.f32.gmra.mxu1 %v356_v53 }
 0x11b   :  { %857 = vmatprep.mubr.f32.mxu1 %v357_v57 }
 0x11e   :  { %858 = vmatmul.mubr.f32.gmra.mxu1 %v358_v58 }
 0x11f   :  { %860 = vmatprep.mubr.f32.mxu1 %v359_v59 }
 0x122   :  { %861 = vmatmul.mubr.f32.gmra.mxu1 %v360_v60  ;;  %v391_v60 = vpop.permute.xlu0 %390 }
 0x123   :  { %863 = vmatprep.mubr.f32.mxu1 %v361_v61 }
 0x126   :  { %864 = vmatmul.mubr.f32.gmra.mxu1 %v362_v62 }
 0x127   :  { %866 = vmatprep.mubr.f32.mxu1 %v363_v63  ;;  %v386_v63 = vpop.permute.xlu1 %385 }
 0x12a   :  { %867 = vmatmul.mubr.f32.gmra.mxu1 %v364_v0 }
 0x12b   :  { %869 = vmatprep.mubr.f32.mxu1 %v365_v1 }
 0x12e   :  { %870 = vmatmul.mubr.f32.gmra.mxu1 %v366_v2 }
 0x1d2   :  { %v1047_v4 = vpop.f32.mrf.mxu1 }
 0x1d3   :  { %v535_v61 = vadd.f32 %v1047_v4, %v391_v60  ;;  %v699_v4 = vpop.permute.xlu0 %698 }
 0x1d4   :  { %v1049_v5 = vpop.f32.mrf.mxu1 }
 0x1d5   :  { %v530_v0 = vadd.f32 %v1049_v5, %v386_v63  ;;  %v609_v2 = vmax.f32 %v535_v61, 0.0 }
 0x1d6   :  { %v1051_v6 = vpop.f32.mrf.mxu1 }
 0x1d7   :  { %v545_v53 = vadd.f32 %v1051_v6, %v401_v54  ;;  %v608_v6 = vmax.f32 %v530_v0, 0.0 }
 0x1d8   :  { %v1053_v7 = vpop.f32.mrf.mxu1 }
 0x1d9   :  { %v540_v58 = vadd.f32 %v1053_v7, %v396_v56  ;;  %v611_v62 = vmax.f32 %v545_v53, 0.0  ;;  %v624_v7 = vld [vmem:[#allocation2 + $0x80] sm:$0xff] }
 0x1da   :  { %v856_v8 = vpop.f32.mrf.mxu1 }
 0x1db   :  { %v555_v50 = vadd.f32 %v856_v8, %v411_v44  ;;  %v610_v1 = vmax.f32 %v540_v58, 0.0 }
 0x1dc   :  { %v549_v9 = vpop.f32.mrf.mxu1 }
 0x1dd   :  { %v550_v55 = vadd.f32 %v549_v9, %v406_v47  ;;  %v613_v57 = vmax.f32 %v555_v50, 0.0 }
 0x1de   :  { %v859_v11 = vpop.f32.mrf.mxu1 }
 0x1df   :  { %v565_v45 = vadd.f32 %v859_v11, %v421_v36  ;;  %v612_v59 = vmax.f32 %v550_v55, 0.0 }
 0x1e0   :  { %v559_v13 = vpop.f32.mrf.mxu1 }
 0x1e1   :  { %v560_v48 = vadd.f32 %v559_v13, %v416_v39  ;;  %v615_v51 = vmax.f32 %v565_v45, 0.0 }
 0x1e2   :  { %v862_v14 = vpop.f32.mrf.mxu1 }
 0x1e3   :  { %v575_v40 = vadd.f32 %v862_v14, %v431_v26  ;;  %v614_v52 = vmax.f32 %v560_v48, 0.0 }
 0x1e4   :  { %v569_v16 = vpop.f32.mrf.mxu1 }
 0x1e5   :  { %v570_v42 = vadd.f32 %v569_v16, %v426_v31  ;;  %v617_v46 = vmax.f32 %v575_v40, 0.0 }
 0x1e6   :  { %v865_v18 = vpop.f32.mrf.mxu1 }
 0x1e7   :  { %v585_v34 = vadd.f32 %v865_v18, %v441_v20  ;;  %v616_v49 = vmax.f32 %v570_v42, 0.0 }
 0x1e8   :  { %v579_v19 = vpop.f32.mrf.mxu1 }
 0x1e9   :  { %v580_v37 = vadd.f32 %v579_v19, %v436_v22  ;;  %v619_v41 = vmax.f32 %v585_v34, 0.0 }
 0x1ea   :  { %v868_v21 = vpop.f32.mrf.mxu1 }
 0x1eb   :  { %v595_v28 = vadd.f32 %v868_v21, %v451_v15  ;;  %v618_v43 = vmax.f32 %v580_v37, 0.0 }
 0x1ec   :  { %v589_v23 = vpop.f32.mrf.mxu1 }
 0x1ed   :  { %v590_v32 = vadd.f32 %v589_v23, %v446_v17  ;;  %v621_v35 = vmax.f32 %v595_v28, 0.0 }
 0x1ee   :  { %v871_v24 = vpop.f32.mrf.mxu1 }
 0x1ef   :  { %v605_v25 = vadd.f32 %v871_v24, %v461_v10  ;;  %v620_v38 = vmax.f32 %v590_v32, 0.0 }
 0x1f0   :  { %v599_v27 = vpop.f32.mrf.mxu1 }
 0x1f1   :  { %v623_v29 = vmax.f32 %v605_v25, 0.0  ;;  %v600_v30 = vadd.f32 %v599_v27, %v456_v12 }
 0x1f3   :  { %v622_v33 = vmax.f32 %v600_v30, 0.0  ;;  %873 = vmatpush3.msra.mxu0 %v623_v29 }
 0x1f4   :  { %874 = vmatprep.subr.mxu0 %v941_v3 }
 0x1f5   :  { %875 = vmatpush3.msra.mxu0 %v622_v33 }
 0x1f6   :  { %876 = vmatprep.subr.mxu0 %v941_v3 }
 0x1f7   :  { %877 = vmatpush3.msra.mxu0 %v621_v35 }
 0x1f8   :  { %878 = vmatprep.subr.mxu0 %v941_v3 }
 0x1f9   :  { %879 = vmatpush3.msra.mxu0 %v620_v38 }
 0x1fa   :  { %880 = vmatprep.subr.mxu0 %v941_v3 }
 0x1fb   :  { %881 = vmatpush3.msra.mxu0 %v619_v41 }
 0x1fc   :  { %882 = vmatprep.subr.mxu0 %v941_v3 }
 0x1fd   :  { %883 = vmatpush3.msra.mxu0 %v618_v43 }
 0x1fe   :  { %884 = vmatprep.subr.mxu0 %v941_v3 }
 0x1ff   :  { %885 = vmatpush3.msra.mxu0 %v617_v46 }
 0x200   :  { %886 = vmatprep.subr.mxu0 %v941_v3 }
 0x201   :  { %887 = vmatpush3.msra.mxu0 %v616_v49 }
 0x202   :  { %888 = vmatprep.subr.mxu0 %v941_v3 }
 0x203   :  { %889 = vmatpush3.msra.mxu0 %v615_v51 }
 0x204   :  { %890 = vmatprep.subr.mxu0 %v941_v3 }
 0x205   :  { %891 = vmatpush3.msra.mxu0 %v614_v52 }
 0x206   :  { %892 = vmatprep.subr.mxu0 %v941_v3 }
 0x207   :  { %893 = vmatpush3.msra.mxu0 %v613_v57 }
 0x208   :  { %894 = vmatprep.subr.mxu0 %v941_v3 }
 0x209   :  { %895 = vmatpush3.msra.mxu0 %v612_v59 }
 0x20a   :  { %896 = vmatprep.subr.mxu0 %v941_v3 }
 0x20b   :  { %897 = vmatpush3.msra.mxu0 %v611_v62 }
 0x20c   :  { %898 = vmatprep.subr.mxu0 %v941_v3 }
 0x20d   :  { %899 = vmatpush3.msra.mxu0 %v610_v1 }
 0x20e   :  { %900 = vmatprep.subr.mxu0 %v941_v3 }
 0x20f   :  { %901 = vmatpush3.msra.mxu0 %v609_v2 }
 0x210   :  { %902 = vmatprep.subr.mxu0 %v941_v3 }
 0x211   :  { %903 = vmatpush3.msra.mxu0 %v608_v6 }
 0x212   :  { %905 = vmatmul.mubr.f32.vlgmr.msra.gmra.mxu0 %v624_v7 }
 0x2d2   :  { %v691_v8 = vpop.f32.mrf.mxu0 }
 0x2d3   :  { %v701_v9 = vadd.f32 %v699_v4, %v691_v8 }
 0x2d4   :  { %v906_v10 = vpop.f32.mrf.mxu0 }
 0x2d5   :  { %702 = vst [vmem:[%s1080_s3] sm:$0x1] %v701_v9 }
 0x2d6   :  { %707 = vsyncpa [#allocation3], 1 }

</bundles_post_ra>
